<compile_context>
chip_gen: v5e
topology: v5e:2x2
jax: 0.10.0
libtpu: 0.0.40
codegen_flags: <defaults>
</compile_context>

<pallas_src>
import jax
import jax.numpy as jnp
from jax import lax
from jax.experimental import pallas as pl
from jax.experimental.pallas import tpu as pltpu

_LANES = 128
_ACC_ROWS = 32  # accumulator sublanes: breaks the single-vreg dependent-add chain


def _cdiv(a, b):
    return (a + b - 1) // b


def _round_up(x, m):
    return ((x + m - 1) // m) * m


def _chip_defaults():
    """(block_bytes, num_tensorcores) per TPU generation; conservative fallback."""
    kind = ""
    try:
        kind = jax.devices()[0].device_kind.lower()
    except Exception:
        pass
    if "v5 lite" in kind or "v5e" in kind or "v5lite" in kind:
        # 2 MiB blocks -> 8 MiB double-buffered inputs, fits 16 MiB v5e default.
        return 2 << 20, 1
    if "7" in kind:
        # v7x: 2 TensorCores; 4 MiB blocks (16 MiB pipeline) fit 32 MiB default.
        return 4 << 20, 2
    # v6e and unknown chips: 4 MiB blocks fit the 32 MiB scoped default.
    return 4 << 20, 1


def _make_kernel(tile_rows, steps_per_chunk, rows_valid, needs_mask):
    def kernel(pred_ref, tgt_ref, out_ref):
        c = pl.program_id(0)
        s = pl.program_id(1)

        @pl.when(s == 0)
        def _():
            out_ref[...] = jnp.zeros_like(out_ref)

        d = pred_ref[...].astype(jnp.float32) - tgt_ref[...].astype(jnp.float32)
        if needs_mask:
            # Rows beyond the real array in a partial / duplicated boundary
            # block are uninitialized VMEM: zero them BEFORE squaring
            # (jnp.where selects, so NaN garbage cannot propagate).
            row_base = (c * steps_per_chunk + s) * tile_rows
            rows = row_base + lax.broadcasted_iota(jnp.int32, d.shape, 0)
            d = jnp.where(rows < rows_valid, d, 0.0)
        sq = d * d
        # Fold (tile_rows,128)->(tile_rows//ACC, ACC, 128); leading-axis sum is
        # pure VPU vreg adds into ACC independent accumulator vregs (no XLU).
        out_ref[...] += sq.reshape(-1, _ACC_ROWS, _LANES).sum(axis=0)

    return kernel


def mean_wrapper_mse(pred, target, *, block_bytes=None, min_pallas_bytes=1 << 20):
    """Pallas implementation of MeanWrapper(MSELoss(reduction='none'))."""
    assert pred.shape == target.shape, "criterion args assumed equal shapes here"
    total_elems = int(pred.size)
    if total_elems == 0:
        return jnp.float32(jnp.nan)

    itemsize = jnp.dtype(pred.dtype).itemsize
    chip_block_bytes, num_tc = _chip_defaults()
    if block_bytes is None:
        block_bytes = chip_block_bytes

    pred_flat = pred.reshape(-1)
    tgt_flat = target.reshape(-1)

    rows_raw = total_elems // _LANES          # full lane-dense rows
    main_elems = rows_raw * _LANES            # elements handled by the kernel

    # Small-input fast path: pallas_call launch/grid overhead dominates here.
    if total_elems * itemsize < min_pallas_bytes or rows_raw < 8:
        d = pred_flat.astype(jnp.float32) - tgt_flat.astype(jnp.float32)
        return jnp.sum(d * d) / jnp.float32(total_elems)

    # Ragged (<128-element) tail reduced in plain JAX instead of padding
    # (padding via concatenate would re-copy BOTH inputs through HBM).
    tail_sum = jnp.float32(0.0)
    if main_elems != total_elems:
        dt = (pred_flat[main_elems:].astype(jnp.float32)
              - tgt_flat[main_elems:].astype(jnp.float32))
        tail_sum = jnp.sum(dt * dt)

    # Free reshape when total % 128 == 0 (the common ML case): no HBM copy.
    pred2d = pred_flat[:main_elems].reshape(rows_raw, _LANES)
    tgt2d = tgt_flat[:main_elems].reshape(rows_raw, _LANES)

    # Byte-budgeted tile rows (constant pipeline VMEM across dtypes), aligned
    # to the accumulator fold and every dtype's sublane tile (<=32).
    budget_rows = max(_ACC_ROWS, block_bytes // (_LANES * itemsize))
    tile_rows = _round_up(max(min(budget_rows, rows_raw), _ACC_ROWS), _ACC_ROWS)

    steps_total = _cdiv(rows_raw, tile_rows)
    n_chunks = 2 if (num_tc >= 2 and steps_total >= 2) else 1
    steps_per_chunk = _cdiv(steps_total, n_chunks)

    covered_rows = n_chunks * steps_per_chunk * tile_rows
    needs_mask = covered_rows != rows_raw
    needs_clamp = n_chunks * steps_per_chunk > steps_total  # fully-OOB grid tile
    last_tile = steps_total - 1

    if needs_clamp:
        # Duplicate the last real tile for the overhanging grid point; its
        # unclamped row base is >= rows_raw so the kernel masks it to zero.
        def in_map(c, s):
            return (jnp.minimum(c * steps_per_chunk + s, last_tile), 0)
    else:
        def in_map(c, s):
            return (c * steps_per_chunk + s, 0)

    kernel = _make_kernel(tile_rows, steps_per_chunk, rows_raw, needs_mask)

    partials = pl.pallas_call(
        kernel,
        out_shape=jax.ShapeDtypeStruct((n_chunks * _ACC_ROWS, _LANES), jnp.float32),
        grid_spec=pltpu.PrefetchScalarGridSpec(
            num_scalar_prefetch=0,
            grid=(n_chunks, steps_total if n_chunks == 1 else steps_per_chunk),
            in_specs=[
                pl.BlockSpec((tile_rows, _LANES), in_map),
                pl.BlockSpec((tile_rows, _LANES), in_map),
            ],
            # Lane-dense (32,128) partial-sum slab per chunk, resident across
            # the reduction axis; accumulated in place, written back once.
            out_specs=pl.BlockSpec((_ACC_ROWS, _LANES), lambda c, s: (c, 0)),
        ),
        compiler_params=pltpu.CompilerParams(
            dimension_semantics=("parallel", "arbitrary"),
        ),
    )(pred2d, tgt2d)

    # Tiny final reduce + mean in plain JAX (divide by the TRUE element count).
    return (jnp.sum(partials) + tail_sum) / jnp.float32(total_elems)


if __name__ == "__main__":
    key = jax.random.PRNGKey(0)
    k1, k2, k3, k4 = jax.random.split(key, 4)

    # NCHW inputs: batch=2, channels=4, spatial=16x16
    pred = jax.random.normal(k1, (2, 4, 16, 16), dtype=jnp.float32)
    target = jax.random.normal(k2, (2, 4, 16, 16), dtype=jnp.float32)

    # min_pallas_bytes=0 forces the Pallas kernel even at this demo size.
    loss = mean_wrapper_mse(pred, target, min_pallas_bytes=0)
    loss = jax.block_until_ready(loss)
    ref = jnp.mean((pred - target) ** 2)
    assert jnp.allclose(loss, ref, rtol=1e-5, atol=1e-6), (loss, ref)

    # Ragged case: total (2295) is not a multiple of 128 -> exercises the
    # in-kernel row mask and the plain-JAX tail reduction.
    pred2 = jax.random.normal(k3, (3, 5, 17, 9), dtype=jnp.float32)
    target2 = jax.random.normal(k4, (3, 5, 17, 9), dtype=jnp.float32)
    loss2 = jax.block_until_ready(
        mean_wrapper_mse(pred2, target2, min_pallas_bytes=0))
    ref2 = jnp.mean((pred2 - target2) ** 2)
    assert jnp.allclose(loss2, ref2, rtol=1e-5, atol=1e-6), (loss2, ref2)

    print("KERNEL_OK")
</pallas_src>

<mosaic_0001>
module attributes {stable_mosaic.version = 11 : i64} {
  func.func @kernel(%arg0: i32, %arg1: i32, %arg2: memref<32x128xf32, #tpu.memory_space<vmem>>, %arg3: memref<32x128xf32, #tpu.memory_space<vmem>>, %arg4: memref<32x128xf32, #tpu.memory_space<vmem>>) attributes {dimension_semantics = [#tpu.dimension_semantics<parallel>, #tpu.dimension_semantics<arbitrary>], iteration_bounds = array<i64: 1, 1>, scalar_prefetch = 0 : i64, scratch_operands = 0 : i64, tpu.core_type = #tpu.core_type<tc>, window_params = [{transform_indices = @transform_0, window_bounds = array<i64: 32, 128>}, {transform_indices = @transform_1, window_bounds = array<i64: 32, 128>}, {transform_indices = @transform_2, window_bounds = array<i64: 32, 128>}]} {
    %c0_i32 = arith.constant 0 : i32
    %0 = arith.cmpi eq, %arg1, %c0_i32 : i32
    %1 = arith.extui %0 : i1 to i32
    %c0_i32_0 = arith.constant 0 : i32
    %2 = arith.cmpi ne, %1, %c0_i32_0 : i32
    scf.if %2 {
      %cst_9 = arith.constant 0.000000e+00 : f32
      %22 = vector.broadcast %cst_9 : f32 to vector<32x128xf32>
      %c0_10 = arith.constant 0 : index
      %c0_11 = arith.constant 0 : index
      %23 = vector.load %arg4[%c0_10, %c0_11] : memref<32x128xf32, #tpu.memory_space<vmem>>, vector<32x128xf32>
      tpu.vector_store %arg4[%c0_10, %c0_11], %22 {strides = array<i32>} : memref<32x128xf32, #tpu.memory_space<vmem>>, vector<32x128xf32>,
    } else {
    }
    %c0 = arith.constant 0 : index
    %c0_1 = arith.constant 0 : index
    %3 = vector.load %arg2[%c0, %c0_1] : memref<32x128xf32, #tpu.memory_space<vmem>>, vector<32x128xf32>
    %c0_2 = arith.constant 0 : index
    %c0_3 = arith.constant 0 : index
    %4 = vector.load %arg3[%c0_2, %c0_3] : memref<32x128xf32, #tpu.memory_space<vmem>>, vector<32x128xf32>
    %5 = arith.subf %3, %4 : vector<32x128xf32>
    %c1_i32 = arith.constant 1 : i32
    %6 = arith.muli %arg0, %c1_i32 : i32
    %7 = arith.addi %6, %arg1 : i32
    %c32_i32 = arith.constant 32 : i32
    %8 = arith.muli %7, %c32_i32 : i32
    %9 = tpu.iota {dimensions = array<i32: 0>} : vector<32x128xi32>
    %10 = vector.broadcast %8 : i32 to vector<32x128xi32>
    %11 = arith.addi %10, %9 : vector<32x128xi32>
    %c16_i32 = arith.constant 16 : i32
    %12 = vector.broadcast %c16_i32 : i32 to vector<32x128xi32>
    %13 = arith.cmpi slt, %11, %12 : vector<32x128xi32>
    %cst = arith.constant 0.000000e+00 : f32
    %14 = vector.broadcast %cst : f32 to vector<32x128xf32>
    %15 = arith.select %13, %5, %14 : vector<32x128xi1>, vector<32x128xf32>
    %16 = arith.mulf %15, %15 : vector<32x128xf32>
    %c0_4 = arith.constant 0 : index
    %c0_5 = arith.constant 0 : index
    %17 = vector.load %arg4[%c0_4, %c0_5] : memref<32x128xf32, #tpu.memory_space<vmem>>, vector<32x128xf32>
    %18 = vector.shape_cast %16 : vector<32x128xf32> to vector<1x32x128xf32>
    %cst_6 = arith.constant dense<0.000000e+00> : vector<32x128xf32>
    %19 = vector.multi_reduction <add>, %18, %cst_6 [0] : vector<1x32x128xf32> to vector<32x128xf32>
    %20 = arith.addf %17, %19 : vector<32x128xf32>
    %c0_7 = arith.constant 0 : index
    %c0_8 = arith.constant 0 : index
    %21 = vector.load %arg4[%c0_7, %c0_8] : memref<32x128xf32, #tpu.memory_space<vmem>>, vector<32x128xf32>
    tpu.vector_store %arg4[%c0_7, %c0_8], %20 {strides = array<i32>} : memref<32x128xf32, #tpu.memory_space<vmem>>, vector<32x128xf32>,
    return
  }
  func.func @transform_0(%arg0: i32, %arg1: i32) -> (i32, i32) {
    %c1_i32 = arith.constant 1 : i32
    %0 = arith.muli %arg0, %c1_i32 : i32
    %1 = arith.addi %0, %arg1 : i32
    %c0_i32 = arith.constant 0 : i32
    %c0_i32_0 = arith.constant 0 : i32
    return %1, %c0_i32 : i32, i32
  }
  func.func @transform_1(%arg0: i32, %arg1: i32) -> (i32, i32) {
    %c1_i32 = arith.constant 1 : i32
    %0 = arith.muli %arg0, %c1_i32 : i32
    %1 = arith.addi %0, %arg1 : i32
    %c0_i32 = arith.constant 0 : i32
    %c0_i32_0 = arith.constant 0 : i32
    return %1, %c0_i32 : i32, i32
  }
  func.func @transform_2(%arg0: i32, %arg1: i32) -> (i32, i32) {
    %c0_i32 = arith.constant 0 : i32
    %c0_i32_0 = arith.constant 0 : i32
    return %arg0, %c0_i32 : i32, i32
  }
}

</mosaic_0001>

<bundles_post_ra>
// kernel: tpu_custom_call.1
= control target key start
LH: loop header
LB: loop body
LE: loop exit
PB: predicated region body
PF: predicated region fallthrough
CT: control target
= control target key end

     0   :  { %7 = vsyncpa [#allocation3], 0  ;;  %s273_s0 = inlined_call_operand.hbm [shape: f32[16,128], index: 0, kind: input, shape index: {}]   ;;  %s274_s1 = inlined_call_operand.hbm [shape: f32[16,128], index: 1, kind: input, shape index: {}]   ;;  %s275_s2 = inlined_call_operand.hbm [shape: f32[32,128], index: 2, kind: output, shape index: {}]  }
   0x1   :  { %8 = vsyncpa [#allocation6], 0 }
   0x2   :  { %9 = vsyncpa [#allocation4], 0 }
   0x3   :  { %18 = vsyncadd [#allocation3], 256  ;;  %s23_s11 = sshll.u32 %s273_s0, 4  ;;  %s234_s12 = smov [#allocation2]   ;;  %s24_s11 = int_to_ptr.hbm [resolvable:$true] %s23_s11 }
   0x4   :  { %s25_s13 = sshll.u32 %s234_s12, 4  ;;  %s235_s14 = smov 128   ;;  %s26_s13 = int_to_ptr.vmem [resolvable:$true] %s25_s13 }
   0x5   :  { %s236_s15 = smov 8  }
   0x6   :  { %31 = dma.hbm_to_vmem [thread:$0]  %s24_s11, 256, %s26_s13, [#allocation3], %s235_s14, %s235_s14, %s236_s15  }
   0x7   :  { %40 = vsyncadd [#allocation6], 256  ;;  %s45_s18 = sshll.u32 %s274_s1, 4  ;;  %s237_s19 = smov [#allocation5]   ;;  %s46_s18 = int_to_ptr.hbm [resolvable:$true] %s45_s18 }
   0x8   :  { %s47_s20 = sshll.u32 %s237_s19, 4  ;;  %s48_s20 = int_to_ptr.vmem [resolvable:$true] %s47_s20 }
   0x9   :  { %53 = dma.hbm_to_vmem [thread:$0]  %s46_s18, 256, %s48_s20, [#allocation6], %s235_s14, %s235_s14, %s236_s15  }
   0xa   :  { %228 = dma.done.wait [#allocation3], 512  }
   0xb   :  { %229 = vsyncadd [#allocation3], 4294966784 }
   0xc   :  { %230 = dma.done.wait [#allocation6], 512  }
   0xd   :  { %231 = vsyncadd [#allocation6], 4294966784  ;;  %v238_v0 = vmov 0.0   ;;  %v78_v1 = vld [vmem:[#allocation2] sm:$0xff]  ;;  %v79_v3 = vld [vmem:[#allocation2 + $0x8] sm:$0xff]  ;;  %s239_s0 = smov [#allocation7]  }
   0xe   :  { %128 = vst [vmem:[#allocation7 + $0x10] sm:$0xff] %v238_v0  ;;  %v82_v2 = vld [vmem:[#allocation5] sm:$0xff]  ;;  %v83_v5 = vld [vmem:[#allocation5 + $0x8] sm:$0xff]  ;;  %s134_s1 = sshll.u32 %s239_s0, 4  ;;  %s136_s23 = sshll.u32 %s275_s2, 4  ;;  %s135_s1 = int_to_ptr.vmem [resolvable:$true] %s134_s1  ;;  %s137_s23 = int_to_ptr.hbm [resolvable:$true] %s136_s23 }
   0xf   :  { %129 = vst [vmem:[#allocation7 + $0x18] sm:$0xff] %v238_v0  ;;  %v86_v4 = vsub.f32 %v78_v1, %v82_v2  ;;  %v87_v6 = vsub.f32 %v79_v3, %v83_v5 }
  0x11   :  { %v110_v7 = vmul.f32 %v86_v4, %v86_v4  ;;  %v111_v8 = vmul.f32 %v87_v6, %v87_v6 }
  0x13   :  { %126 = vst [vmem:[#allocation7] sm:$0xff] %v110_v7 }
  0x14   :  { %127 = vst [vmem:[#allocation7 + $0x8] sm:$0xff] %v111_v8 }
  0x15   :  { %142 = dma.vmem_to_hbm [thread:$0]  %s135_s1, 512, %s137_s23, [#allocation4], %s235_s14, %s235_s14, %s236_s15  }
  0x16   :  { %232 = dma.done.wait [#allocation4], 512  }
  0x17   :  { %233 = vsyncadd [#allocation4], 4294966784 }
  0x18   :  { %147 = vsyncpa [#allocation3], 1 }
  0x19   :  { %148 = vsyncpa [#allocation6], 1 }
  0x1a   :  { %149 = vsyncpa [#allocation4], 1 }

</bundles_post_ra>
